<compile_context>
chip_gen: v7x
topology: tpu7x:2x2x1
jax: 0.10.0
libtpu: 0.0.40
codegen_flags: <defaults>
</compile_context>

<pallas_src>
import jax
import jax.numpy as jnp
from jax import lax
from jax.experimental import pallas as pl
from jax.experimental.pallas import tpu as pltpu

LANES = 128
TILE_ROWS_MAX = 8192  # 4 MiB f32 / 2 MiB bf16 native block per input.


def _round_up(a: int, b: int) -> int:
    return -(-a // b) * b


def _sublane_rows(dtype) -> int:
    # Minimum second-to-last tile dim: 8 for 32-bit, 16 for 16-bit, 32 for 8-bit.
    return max(8, 32 // jnp.dtype(dtype).itemsize)


def _num_tensorcores() -> int:
    """Best-effort TensorCores-per-device; 2-way grid split only helps with >=2."""
    try:
        kind = jax.devices()[0].device_kind.lower()
    except Exception:
        return 1
    if "lite" in kind or "v5e" in kind or "v6e" in kind:
        return 1  # v5e / v6e: single TensorCore per chip.
    if any(tag in kind for tag in ("v7", "7x", "v4", "v5p", "v5")):
        return 2  # v7x dual-TC, v4/v5p megacore.
    return 1


def _make_l1_kernel(rows: int, tile_rows: int, tiles_per_split: int, acc_rows: int):
    """Kernel body with static row count / tiling baked in."""

    def kernel(x_ref, y_ref, o_ref):
        c = pl.program_id(0)  # split (parallel axis)
        i = pl.program_id(1)  # tile within split (reduction axis)

        # Zero the resident (acc_rows, 128) accumulator at the start of a split.
        @pl.when(i == 0)
        def _():
            o_ref[...] = jnp.zeros_like(o_ref)

        # |x - y| in native dtype (bf16 stays packed on the VPU), single cast
        # to f32 before folding.
        absd = jnp.abs(x_ref[...] - y_ref[...]).astype(jnp.float32)

        def fold(a):
            # Pure elementwise vreg adds into `acc_rows/8` interleaved
            # accumulator vregs per lane column (ILP for the LLO scheduler).
            o_ref[...] += a.reshape(tile_rows // acc_rows, acc_rows, LANES).sum(axis=0)

        # Intended (unclamped) global row offset of this tile.
        row0 = (c * tiles_per_split + i) * tile_rows

        # Fast path: interior tile — no per-element mask work at all.
        @pl.when(row0 + tile_rows <= rows)
        def _():
            fold(absd)

        # Edge / clamped tile (at most one or two per call): mask rows that
        # lie past the real row extent (block-padding garbage) to zero.
        @pl.when(row0 + tile_rows > rows)
        def _():
            row_ids = row0 + lax.broadcasted_iota(jnp.int32, (tile_rows, LANES), 0)
            fold(jnp.where(row_ids < rows, absd, 0.0))

    return kernel


def l1_loss(x: jax.Array, y: jax.Array) -> jax.Array:
    """Equivalent of torch.nn.L1Loss() (reduction='mean') forward pass."""
    assert x.shape == y.shape, "L1Loss expects matching shapes"
    count = x.size

    cdtype = jnp.result_type(x.dtype, y.dtype)
    if not jnp.issubdtype(cdtype, jnp.floating):
        cdtype = jnp.float32
    out_dtype = cdtype
    x = x.astype(cdtype)
    y = y.astype(cdtype)

    xf = x.reshape(-1)
    yf = y.reshape(-1)
    rows = count // LANES
    tail = count - rows * LANES
    assert rows < 2**31  # int32 row ids in-kernel

    # <128-element tail handled wrapper-side (no full-array pad copy in HBM).
    tail_sum = jnp.float32(0.0)
    if tail:
        tx = xf[rows * LANES:].astype(jnp.float32)
        ty = yf[rows * LANES:].astype(jnp.float32)
        tail_sum = jnp.sum(jnp.abs(tx - ty))

    if rows == 0:
        # Whole input smaller than one 128-lane row: trivial wrapper reduction.
        total = tail_sum
    else:
        x2 = (xf[: rows * LANES] if tail else xf).reshape(rows, LANES)
        y2 = (yf[: rows * LANES] if tail else yf).reshape(rows, LANES)

        sub = _sublane_rows(cdtype)
        tile_rows = min(TILE_ROWS_MAX, _round_up(rows, sub))
        total_tiles = pl.cdiv(rows, tile_rows)

        # 2-way split only where two TensorCores can actually run it.
        num_splits = 2 if (_num_tensorcores() >= 2 and total_tiles >= 2) else 1
        tiles_per_split = pl.cdiv(total_tiles, num_splits)

        # Resident accumulator width (interleaved partials for fold ILP).
        if tile_rows % 32 == 0:
            acc_rows = 32
        elif tile_rows % 16 == 0:
            acc_rows = 16
        else:
            acc_rows = 8

        def in_map(c, i):
            t = c * tiles_per_split + i
            # Clamp so every block overlaps the real array; fully out-of-range
            # blocks are masked to zero in-kernel.
            return (jnp.minimum(t, total_tiles - 1), 0)

        # VMEM budget: 2 inputs x 2 pipeline buffers of the native block, plus
        # headroom for f32 in-kernel intermediates (diff/abs/iota/where).
        itemsize = jnp.dtype(cdtype).itemsize
        block_bytes = tile_rows * LANES * itemsize
        inter_bytes = 6 * tile_rows * LANES * 4
        vmem_limit = int(min(max(4 * block_bytes + inter_bytes + (2 << 20),
                                 32 << 20), 48 << 20))

        partials = pl.pallas_call(
            _make_l1_kernel(rows, tile_rows, tiles_per_split, acc_rows),
            out_shape=jax.ShapeDtypeStruct((num_splits * acc_rows, LANES),
                                           jnp.float32),
            grid_spec=pltpu.PrefetchScalarGridSpec(
                num_scalar_prefetch=0,
                grid=(num_splits, tiles_per_split),
                in_specs=[
                    pl.BlockSpec((tile_rows, LANES), in_map),
                    pl.BlockSpec((tile_rows, LANES), in_map),
                ],
                out_specs=pl.BlockSpec((acc_rows, LANES), lambda c, i: (c, 0)),
            ),
            compiler_params=pltpu.CompilerParams(
                dimension_semantics=("parallel", "arbitrary"),
                vmem_limit_bytes=vmem_limit,
            ),
        )(x2, y2)

        total = jnp.sum(partials) + tail_sum

    return (total / count).astype(out_dtype)


if __name__ == "__main__":
    key = jax.random.PRNGKey(0)

    # Primary example: matches the module's implied small input shape.
    kx, ky = jax.random.split(key)
    shape = (2, 4, 16, 16)
    x = jax.random.normal(kx, shape, dtype=jnp.float32)
    y = jax.random.normal(ky, shape, dtype=jnp.float32)
    loss = l1_loss(x, y)
    jax.block_until_ready(loss)
    ref = jnp.mean(jnp.abs(x - y))
    assert jnp.allclose(loss, ref, rtol=1e-4, atol=1e-6), (loss, ref)

    # Extra f32 sanity checks:
    #  (3,5,7)      -> <128 elems, pure wrapper tail path
    #  (17,129)     -> unaligned (prefix + tail) with masked edge tile
    #  (320,1024)   -> aligned single large tile, fast path only
    #  (1100,1024)  -> multi-tile with masked edge (+ 2-way split on dual-TC)
    for extra_shape in [(3, 5, 7), (17, 129), (320, 1024), (1100, 1024)]:
        k1, k2, key = jax.random.split(key, 3)
        xe = jax.random.normal(k1, extra_shape, dtype=jnp.float32)
        ye = jax.random.normal(k2, extra_shape, dtype=jnp.float32)
        le = l1_loss(xe, ye)
        jax.block_until_ready(le)
        re_ = jnp.mean(jnp.abs(xe - ye))
        assert jnp.allclose(le, re_, rtol=1e-4, atol=1e-6), (extra_shape, le, re_)

    # bf16 sanity check (native packed diff, 16-row sublane tiling).
    k1, k2, key = jax.random.split(key, 3)
    xb = jax.random.normal(k1, (64, 300), dtype=jnp.bfloat16)
    yb = jax.random.normal(k2, (64, 300), dtype=jnp.bfloat16)
    lb = l1_loss(xb, yb)
    jax.block_until_ready(lb)
    rb = jnp.mean(jnp.abs(xb.astype(jnp.float32) - yb.astype(jnp.float32)))
    assert jnp.allclose(jnp.float32(lb), rb, rtol=2e-2), (lb, rb)

    print("KERNEL_OK")
</pallas_src>

<mosaic_0001>
module attributes {stable_mosaic.version = 11 : i64} {
  func.func @kernel(%arg0: i32, %arg1: i32, %arg2: memref<16x128xf32, #tpu.memory_space<vmem>>, %arg3: memref<16x128xf32, #tpu.memory_space<vmem>>, %arg4: memref<16x128xf32, #tpu.memory_space<vmem>>) attributes {dimension_semantics = [#tpu.dimension_semantics<parallel>, #tpu.dimension_semantics<arbitrary>], iteration_bounds = array<i64: 1, 1>, scalar_prefetch = 0 : i64, scratch_operands = 0 : i64, tpu.core_type = #tpu.core_type<tc>, window_params = [{transform_indices = @transform_0, window_bounds = array<i64: 16, 128>}, {transform_indices = @transform_1, window_bounds = array<i64: 16, 128>}, {transform_indices = @transform_2, window_bounds = array<i64: 16, 128>}]} {
    %c0_i32 = arith.constant 0 : i32
    %0 = arith.cmpi eq, %arg1, %c0_i32 : i32
    %1 = arith.extui %0 : i1 to i32
    %c0_i32_0 = arith.constant 0 : i32
    %2 = arith.cmpi ne, %1, %c0_i32_0 : i32
    scf.if %2 {
      %cst = arith.constant 0.000000e+00 : f32
      %18 = vector.broadcast %cst : f32 to vector<16x128xf32>
      %c0_10 = arith.constant 0 : index
      %c0_11 = arith.constant 0 : index
      %19 = vector.load %arg4[%c0_10, %c0_11] : memref<16x128xf32, #tpu.memory_space<vmem>>, vector<16x128xf32>
      tpu.vector_store %arg4[%c0_10, %c0_11], %18 {strides = array<i32>} : memref<16x128xf32, #tpu.memory_space<vmem>>, vector<16x128xf32>,
    } else {
    }
    %c0 = arith.constant 0 : index
    %c0_1 = arith.constant 0 : index
    %3 = vector.load %arg2[%c0, %c0_1] : memref<16x128xf32, #tpu.memory_space<vmem>>, vector<16x128xf32>
    %c0_2 = arith.constant 0 : index
    %c0_3 = arith.constant 0 : index
    %4 = vector.load %arg3[%c0_2, %c0_3] : memref<16x128xf32, #tpu.memory_space<vmem>>, vector<16x128xf32>
    %5 = arith.subf %3, %4 : vector<16x128xf32>
    %6 = math.absf %5 : vector<16x128xf32>
    %c1_i32 = arith.constant 1 : i32
    %7 = arith.muli %arg0, %c1_i32 : i32
    %8 = arith.addi %7, %arg1 : i32
    %c16_i32 = arith.constant 16 : i32
    %9 = arith.muli %8, %c16_i32 : i32
    %c16_i32_4 = arith.constant 16 : i32
    %10 = arith.addi %9, %c16_i32_4 : i32
    %c16_i32_5 = arith.constant 16 : i32
    %11 = arith.cmpi sle, %10, %c16_i32_5 : i32
    %12 = arith.extui %11 : i1 to i32
    %c0_i32_6 = arith.constant 0 : i32
    %13 = arith.cmpi ne, %12, %c0_i32_6 : i32
    scf.if %13 {
      %c0_10 = arith.constant 0 : index
      %c0_11 = arith.constant 0 : index
      %18 = vector.load %arg4[%c0_10, %c0_11] : memref<16x128xf32, #tpu.memory_space<vmem>>, vector<16x128xf32>
      %19 = vector.shape_cast %6 : vector<16x128xf32> to vector<1x16x128xf32>
      %cst = arith.constant dense<0.000000e+00> : vector<16x128xf32>
      %20 = vector.multi_reduction <add>, %19, %cst [0] : vector<1x16x128xf32> to vector<16x128xf32>
      %21 = arith.addf %18, %20 : vector<16x128xf32>
      %c0_12 = arith.constant 0 : index
      %c0_13 = arith.constant 0 : index
      %22 = vector.load %arg4[%c0_12, %c0_13] : memref<16x128xf32, #tpu.memory_space<vmem>>, vector<16x128xf32>
      tpu.vector_store %arg4[%c0_12, %c0_13], %21 {strides = array<i32>} : memref<16x128xf32, #tpu.memory_space<vmem>>, vector<16x128xf32>,
    } else {
    }
    %c16_i32_7 = arith.constant 16 : i32
    %14 = arith.addi %9, %c16_i32_7 : i32
    %c16_i32_8 = arith.constant 16 : i32
    %15 = arith.cmpi sgt, %14, %c16_i32_8 : i32
    %16 = arith.extui %15 : i1 to i32
    %c0_i32_9 = arith.constant 0 : i32
    %17 = arith.cmpi ne, %16, %c0_i32_9 : i32
    scf.if %17 {
      %18 = tpu.iota {dimensions = array<i32: 0>} : vector<16x128xi32>
      %19 = vector.broadcast %9 : i32 to vector<16x128xi32>
      %20 = arith.addi %19, %18 : vector<16x128xi32>
      %c16_i32_10 = arith.constant 16 : i32
      %21 = vector.broadcast %c16_i32_10 : i32 to vector<16x128xi32>
      %22 = arith.cmpi slt, %20, %21 : vector<16x128xi32>
      %cst = arith.constant 0.000000e+00 : f32
      %23 = vector.broadcast %cst : f32 to vector<16x128xf32>
      %24 = arith.select %22, %6, %23 : vector<16x128xi1>, vector<16x128xf32>
      %c0_11 = arith.constant 0 : index
      %c0_12 = arith.constant 0 : index
      %25 = vector.load %arg4[%c0_11, %c0_12] : memref<16x128xf32, #tpu.memory_space<vmem>>, vector<16x128xf32>
      %26 = vector.shape_cast %24 : vector<16x128xf32> to vector<1x16x128xf32>
      %cst_13 = arith.constant dense<0.000000e+00> : vector<16x128xf32>
      %27 = vector.multi_reduction <add>, %26, %cst_13 [0] : vector<1x16x128xf32> to vector<16x128xf32>
      %28 = arith.addf %25, %27 : vector<16x128xf32>
      %c0_14 = arith.constant 0 : index
      %c0_15 = arith.constant 0 : index
      %29 = vector.load %arg4[%c0_14, %c0_15] : memref<16x128xf32, #tpu.memory_space<vmem>>, vector<16x128xf32>
      tpu.vector_store %arg4[%c0_14, %c0_15], %28 {strides = array<i32>} : memref<16x128xf32, #tpu.memory_space<vmem>>, vector<16x128xf32>,
    } else {
    }
    return
  }
  func.func @transform_0(%arg0: i32, %arg1: i32) -> (i32, i32) {
    %c1_i32 = arith.constant 1 : i32
    %0 = arith.muli %arg0, %c1_i32 : i32
    %1 = arith.addi %0, %arg1 : i32
    %c0_i32 = arith.constant 0 : i32
    %2 = arith.minsi %1, %c0_i32 : i32
    %c0_i32_0 = arith.constant 0 : i32
    %c0_i32_1 = arith.constant 0 : i32
    return %2, %c0_i32_0 : i32, i32
  }
  func.func @transform_1(%arg0: i32, %arg1: i32) -> (i32, i32) {
    %c1_i32 = arith.constant 1 : i32
    %0 = arith.muli %arg0, %c1_i32 : i32
    %1 = arith.addi %0, %arg1 : i32
    %c0_i32 = arith.constant 0 : i32
    %2 = arith.minsi %1, %c0_i32 : i32
    %c0_i32_0 = arith.constant 0 : i32
    %c0_i32_1 = arith.constant 0 : i32
    return %2, %c0_i32_0 : i32, i32
  }
  func.func @transform_2(%arg0: i32, %arg1: i32) -> (i32, i32) {
    %c0_i32 = arith.constant 0 : i32
    %c0_i32_0 = arith.constant 0 : i32
    return %arg0, %c0_i32 : i32, i32
  }
}

</mosaic_0001>

<bundles_post_ra>
// kernel: tpu_custom_call.1
= control target key start
LH: loop header
LB: loop body
LE: loop exit
PB: predicated region body
PF: predicated region fallthrough
CT: control target
= control target key end

     0   :  { %7 = vsyncpa [#allocation3], 0  ;;  %s276_s0 = inlined_call_operand.hbm [shape: f32[16,128], index: 0, kind: input, shape index: {}]   ;;  %s277_s1 = inlined_call_operand.hbm [shape: f32[16,128], index: 1, kind: input, shape index: {}]   ;;  %s278_s2 = inlined_call_operand.hbm [shape: f32[16,128], index: 2, kind: output, shape index: {}]  }
   0x1   :  { %8 = vsyncpa [#allocation6], 0 }
   0x2   :  { %9 = vsyncpa [#allocation4], 0  ;;  %s211_s9 = smov [#allocation2]   ;;  %s139_s13 = scalar_lea.hbm %s276_s0, 256 }
   0x3   :  { %s21_s10 = sshll.u32 %s211_s9, 4  ;;  %p140_p0 = scmp.ne.s32.totalorder %s276_s0, %s139_s13  ;;  %s22_s10 = int_to_ptr.vmem [resolvable:$true] %s21_s10 }
   0x4   :  { %p143_p1 = scmp.lt.u32.totalorder %s139_s13, %s276_s0 }
   0x6   :  { %p145_p2 = pnand %p143_p1, %p140_p0 }
   0x8   :  { %148 = shalt.err (!%p145_p2)
}
   0x9   :  { %s149_s18 = scalar_lea.vmem %s22_s10, 256  ;;  %p154_p4 = scmp.lt.s32.totalorder %s22_s10, %s22_s10 }
   0xa   :  { %p150_p3 = scmp.ne.s32.totalorder %s22_s10, %s149_s18  ;;  %p155_p5 = scmp.lt.s32.totalorder %s149_s18, %s149_s18 }
   0xc   :  { %p156_p6 = por %p155_p5, %p154_p4 }
   0xe   :  { %p157_p7 = pnand %p156_p6, %p150_p3 }
  0x10   :  { %160 = shalt.err (!%p157_p7)
}
  0x11   :  { %s212_s19 = smov 128   ;;  %s213_s20 = smov 8  }
  0x12   :  { %27 = dma.hbm_to_vmem [thread:$0]  %s276_s0, 256, %s22_s10, [#allocation3], %s212_s19, %s212_s19, %s213_s20  }
  0x13   :  { %s214_s23 = smov [#allocation5]   ;;  %s161_s27 = scalar_lea.hbm %s277_s1, 256 }
  0x14   :  { %s39_s24 = sshll.u32 %s214_s23, 4  ;;  %p162_p8 = scmp.ne.s32.totalorder %s277_s1, %s161_s27  ;;  %s40_s24 = int_to_ptr.vmem [resolvable:$true] %s39_s24 }
  0x15   :  { %p165_p9 = scmp.lt.u32.totalorder %s161_s27, %s277_s1 }
  0x17   :  { %p167_p10 = pnand %p165_p9, %p162_p8 }
  0x19   :  { %170 = shalt.err (!%p167_p10)
}
  0x1a   :  { %s171_s4 = scalar_lea.vmem %s40_s24, 256  ;;  %p176_p12 = scmp.lt.s32.totalorder %s40_s24, %s40_s24 }
  0x1b   :  { %p172_p11 = scmp.ne.s32.totalorder %s40_s24, %s171_s4  ;;  %p177_p13 = scmp.lt.s32.totalorder %s171_s4, %s171_s4 }
  0x1d   :  { %p178_p0 = por %p177_p13, %p176_p12 }
  0x1f   :  { %p179_p1 = pnand %p178_p0, %p172_p11 }
  0x21   :  { %182 = shalt.err (!%p179_p1)
}
  0x22   :  { %45 = dma.hbm_to_vmem [thread:$0]  %s277_s1, 256, %s40_s24, [#allocation6], %s212_s19, %s212_s19, %s213_s20  }
  0x23   :  { %205 = dma.done.wait [#allocation3], 256  }
  0x24   :  { %206 = vsyncadd [#allocation3], 4294967040 }
  0x25   :  { %207 = dma.done.wait [#allocation6], 256  }
  0x26   :  { %208 = vsyncadd [#allocation6], 4294967040  ;;  %v66_v0 = vld [vmem:[#allocation2] sm:$0xff]  ;;  %v68_v1 = vld [vmem:[#allocation5] sm:$0xff]  ;;  %s215_s6 = smov [#allocation7]  }
  0x27   :  { %v67_v2 = vld [vmem:[#allocation2 + $0x8] sm:$0xff]  ;;  %v70_v3 = vsub.f32 %v66_v0, %v68_v1  ;;  %v69_v4 = vld [vmem:[#allocation5 + $0x8] sm:$0xff]  ;;  %s116_s7 = sshll.u32 %s215_s6, 4  ;;  %s117_s7 = int_to_ptr.vmem [resolvable:$true] %s116_s7 }
  0x28   :  { %v71_v5 = vsub.f32 %v67_v2, %v69_v4  ;;  %s183_s8 = scalar_lea.vmem %s117_s7, 256  ;;  %p188_p3 = scmp.lt.s32.totalorder %s117_s7, %s117_s7 }
  0x29   :  { %v72_v6 = vand.u32 2147483647, %v70_v3  ;;  %p184_p2 = scmp.ne.s32.totalorder %s117_s7, %s183_s8  ;;  %p189_p4 = scmp.lt.s32.totalorder %s183_s8, %s183_s8 }
  0x2a   :  { %v73_v7 = vand.u32 2147483647, %v71_v5 }
  0x2b   :  { %87 = vst [vmem:[#allocation7] sm:$0xff] %v72_v6  ;;  %p190_p5 = por %p189_p4, %p188_p3 }
  0x2c   :  { %88 = vst [vmem:[#allocation7 + $0x8] sm:$0xff] %v73_v7 }
  0x2d   :  { %p191_p6 = pnand %p190_p5, %p184_p2 }
  0x2f   :  { %194 = shalt.err (!%p191_p6)
}
  0x30   :  { %s195_s10 = scalar_lea.hbm %s278_s2, 256 }
  0x31   :  { %p196_p7 = scmp.ne.s32.totalorder %s278_s2, %s195_s10  ;;  %p199_p8 = scmp.lt.u32.totalorder %s195_s10, %s278_s2 }
  0x33   :  { %p201_p9 = pnand %p199_p8, %p196_p7 }
  0x35   :  { %204 = shalt.err (!%p201_p9)
}
  0x36   :  { %122 = dma.vmem_to_hbm [thread:$0]  %s117_s7, 256, %s278_s2, [#allocation4], %s212_s19, %s212_s19, %s213_s20  }
  0x37   :  { %209 = dma.done.wait [#allocation4], 256  }
  0x38   :  { %210 = vsyncadd [#allocation4], 4294967040 }
  0x39   :  { %126 = vsyncpa [#allocation3], 1 }
  0x3a   :  { %127 = vsyncpa [#allocation6], 1 }
  0x3b   :  { %128 = vsyncpa [#allocation4], 1 }

</bundles_post_ra>
